<compile_context>
chip_gen: v5e
topology: v5e:2x2
jax: 0.10.0
libtpu: 0.0.40
codegen_flags: <defaults>
</compile_context>

<pallas_src>
import functools
import math

import jax
import jax.numpy as jnp
from jax.experimental import pallas as pl
from jax.experimental.pallas import tpu as pltpu


def _round_up(x, m):
    return (x + m - 1) // m * m


def _pick_pixel_tile(hw_padded, cap_lanes):
    """Largest multiple of 128 that divides hw_padded and is <= cap_lanes."""
    g = hw_padded // 128
    cap_g = max(1, cap_lanes // 128)
    best, d = 1, 1
    while d * d <= g:
        if g % d == 0:
            if d <= cap_g:
                best = max(best, d)
            q = g // d
            if q <= cap_g:
                best = max(best, q)
        d += 1
    return best * 128


# ----------------------------------------------------------------------------
# Pallas kernel: one (Cout_p, Cin) @ (Cin, t_hw) MXU matmul + bias epilogue.
# ----------------------------------------------------------------------------
def _conv1x1_kernel(x_ref, w_ref, b_ref, o_ref):
    # x_ref: (1, Cin, t_hw)  activations (channels on sublanes, pixels on lanes)
    # w_ref: (Cout_p, Cin)   weights (VMEM-resident across the whole grid)
    # b_ref: (Cout_p, 1)     bias
    # o_ref: (1, Cout_p, t_hw)
    y = jnp.dot(w_ref[...], x_ref[0], preferred_element_type=jnp.float32)
    o_ref[0] = (y + b_ref[...]).astype(o_ref.dtype)


@functools.lru_cache(maxsize=None)
def _build_conv1x1(N, Cin, Cout_p, HW_pad, t_hw, dtype_name):
    dtype = jnp.dtype(dtype_name)
    return pl.pallas_call(
        _conv1x1_kernel,
        out_shape=jax.ShapeDtypeStruct((N, Cout_p, HW_pad), dtype),
        grid=(N, HW_pad // t_hw),
        in_specs=[
            pl.BlockSpec((1, Cin, t_hw), lambda n, j: (n, 0, j)),   # activations
            pl.BlockSpec((Cout_p, Cin), lambda n, j: (0, 0)),       # weights
            pl.BlockSpec((Cout_p, 1), lambda n, j: (0, 0)),         # bias
        ],
        out_specs=pl.BlockSpec((1, Cout_p, t_hw), lambda n, j: (n, 0, j)),
        compiler_params=pltpu.CompilerParams(
            dimension_semantics=("parallel", "parallel"),
        ),
    )


# ----------------------------------------------------------------------------
# Forward: NCHW stays NCHW.  One jit for everything around the Pallas call.
# ----------------------------------------------------------------------------
@functools.partial(jax.jit, static_argnames=("cout",))
def _out_conv_forward(x_nchw, w_p, b_p, *, cout):
    N, Cin, H, W = x_nchw.shape
    Cout_p = w_p.shape[0]
    HW = H * W

    HW_pad = _round_up(HW, 128)                      # lane alignment only
    bytes_per = jnp.dtype(x_nchw.dtype).itemsize
    cap = max(128, min(4096, (2 * 1024 * 1024) // max(1, Cin * bytes_per)))
    t_hw = _pick_pixel_tile(HW_pad, cap)             # divides HW_pad exactly

    x3 = x_nchw.reshape(N, Cin, HW)                  # free (contiguous) reshape
    if HW_pad != HW:
        x3 = jnp.pad(x3, ((0, 0), (0, 0), (0, HW_pad - HW)))

    y = _build_conv1x1(N, Cin, Cout_p, HW_pad, t_hw, x_nchw.dtype.name)(x3, w_p, b_p)

    return y[:, :cout, :HW].reshape(N, cout, H, W)


class OutConvPallas:
    """Pallas TPU equivalent of OutConv: nn.Conv2d(in_ch, out_ch, kernel_size=1)."""

    def __init__(self, weight, bias):
        # weight: (Cout, Cin, 1, 1) in PyTorch layout; bias: (Cout,)
        Cout, Cin, kh, kw = weight.shape
        assert kh == 1 and kw == 1, "OutConv is a 1x1 convolution"
        self.cin, self.cout = Cin, Cout
        Cout_p = _round_up(Cout, 8)   # sublane-align the output-channel axis ONCE
        wmat = weight.reshape(Cout, Cin)
        self.w_p = jnp.pad(wmat, ((0, Cout_p - Cout), (0, 0)))            # (Cout_p, Cin)
        self.b_p = jnp.pad(bias, (0, Cout_p - Cout)).reshape(Cout_p, 1)   # (Cout_p, 1)

    def __call__(self, x_nchw):
        assert x_nchw.shape[1] == self.cin
        return _out_conv_forward(x_nchw, self.w_p, self.b_p, cout=self.cout)


# ----------------------------------------------------------------------------
if __name__ == "__main__":
    key = jax.random.PRNGKey(0)
    kx, kw, kb = jax.random.split(key, 3)

    # Small shapes consistent with the module's use as a UNet head: OutConv(32, 1).
    N, Cin, H, W = 2, 32, 16, 16
    Cout = 1

    bound = 1.0 / math.sqrt(Cin)  # PyTorch Conv2d default init bound for k=1
    weight = jax.random.uniform(kw, (Cout, Cin, 1, 1), jnp.float32, -bound, bound)
    bias = jax.random.uniform(kb, (Cout,), jnp.float32, -bound, bound)
    x = jax.random.normal(kx, (N, Cin, H, W), jnp.float32)

    mod = OutConvPallas(weight, bias)
    y = mod(x)
    jax.block_until_ready(y)
    assert y.shape == (N, Cout, H, W)

    # Correctness check against a plain XLA reference.
    ref = jnp.einsum("nchw,oc->nohw", x, weight.reshape(Cout, Cin),
                     precision=jax.lax.Precision.HIGHEST) + bias[None, :, None, None]
    err = float(jnp.max(jnp.abs(y - ref)))
    assert jnp.allclose(y, ref, atol=1e-3, rtol=1e-3), f"max abs err {err}"

    print("KERNEL_OK")
</pallas_src>

<mosaic_0001>
module attributes {stable_mosaic.version = 11 : i64} {
  func.func @_conv1x1_kernel(%arg0: i32, %arg1: i32, %arg2: memref<1x32x256xf32, #tpu.memory_space<vmem>>, %arg3: memref<8x32xf32, #tpu.memory_space<vmem>>, %arg4: memref<8x1xf32, #tpu.memory_space<vmem>>, %arg5: memref<1x8x256xf32, #tpu.memory_space<vmem>>) attributes {dimension_semantics = [#tpu.dimension_semantics<parallel>, #tpu.dimension_semantics<parallel>], iteration_bounds = array<i64: 2, 1>, scalar_prefetch = 0 : i64, scratch_operands = 0 : i64, tpu.core_type = #tpu.core_type<tc>, window_params = [{transform_indices = @transform_0, window_bounds = array<i64: 1, 32, 256>}, {pipeline_mode = #tpu.pipeline_mode<synchronous>, transform_indices = @transform_1, window_bounds = array<i64: 8, 32>}, {pipeline_mode = #tpu.pipeline_mode<synchronous>, transform_indices = @transform_2, window_bounds = array<i64: 8, 1>}, {transform_indices = @transform_3, window_bounds = array<i64: 1, 8, 256>}]} {
    %c0 = arith.constant 0 : index
    %c0_0 = arith.constant 0 : index
    %0 = vector.load %arg3[%c0, %c0_0] : memref<8x32xf32, #tpu.memory_space<vmem>>, vector<8x32xf32>
    %c0_1 = arith.constant 0 : index
    %c0_2 = arith.constant 0 : index
    %c0_3 = arith.constant 0 : index
    %1 = vector.load %arg2[%c0_1, %c0_2, %c0_3] : memref<1x32x256xf32, #tpu.memory_space<vmem>>, vector<1x32x256xf32>
    %2 = vector.shape_cast %1 : vector<1x32x256xf32> to vector<32x256xf32>
    %cst = arith.constant dense<0.000000e+00> : vector<8x256xf32>
    %3 = tpu.matmul %0, %2, %cst {dimension_numbers = #tpu.dot_dimension_numbers<[1], [0], [0], [1], [0, 0, 1, 1], [], []>} : vector<8x32xf32>, vector<32x256xf32>, vector<8x256xf32> -> vector<8x256xf32>
    %c0_4 = arith.constant 0 : index
    %c0_5 = arith.constant 0 : index
    %4 = vector.load %arg4[%c0_4, %c0_5] : memref<8x1xf32, #tpu.memory_space<vmem>>, vector<8x1xf32>
    %5 = vector.broadcast %4 : vector<8x1xf32> to vector<8x256xf32>
    %6 = arith.addf %3, %5 : vector<8x256xf32>
    %c0_6 = arith.constant 0 : index
    %c0_7 = arith.constant 0 : index
    %c0_8 = arith.constant 0 : index
    %7 = vector.load %arg5[%c0_6, %c0_7, %c0_8] : memref<1x8x256xf32, #tpu.memory_space<vmem>>, vector<1x8x256xf32>
    %8 = vector.shape_cast %7 : vector<1x8x256xf32> to vector<8x256xf32>
    %9 = vector.shape_cast %6 : vector<8x256xf32> to vector<1x8x256xf32>
    tpu.vector_store %arg5[%c0_6, %c0_7, %c0_8], %9 {strides = array<i32>} : memref<1x8x256xf32, #tpu.memory_space<vmem>>, vector<1x8x256xf32>,
    return
  }
  func.func @transform_0(%arg0: i32, %arg1: i32) -> (i32, i32, i32) {
    %c0_i32 = arith.constant 0 : i32
    %c0_i32_0 = arith.constant 0 : i32
    return %arg0, %c0_i32, %arg1 : i32, i32, i32
  }
  func.func @transform_1(%arg0: i32, %arg1: i32) -> (i32, i32) {
    %c0_i32 = arith.constant 0 : i32
    %c0_i32_0 = arith.constant 0 : i32
    %c0_i32_1 = arith.constant 0 : i32
    return %c0_i32, %c0_i32_0 : i32, i32
  }
  func.func @transform_2(%arg0: i32, %arg1: i32) -> (i32, i32) {
    %c0_i32 = arith.constant 0 : i32
    %c0_i32_0 = arith.constant 0 : i32
    %c0_i32_1 = arith.constant 0 : i32
    return %c0_i32, %c0_i32_0 : i32, i32
  }
  func.func @transform_3(%arg0: i32, %arg1: i32) -> (i32, i32, i32) {
    %c0_i32 = arith.constant 0 : i32
    %c0_i32_0 = arith.constant 0 : i32
    return %arg0, %c0_i32, %arg1 : i32, i32, i32
  }
}

</mosaic_0001>

<bundles_post_ra>
// kernel: _out_conv_forward.1
= control target key start
LH: loop header
LB: loop body
LE: loop exit
PB: predicated region body
PF: predicated region fallthrough
CT: control target
= control target key end

     0   :  { %s444_s12 = smov 0   ;;  %s446_s13 = smov 0   ;;  %s483_s0 = inlined_call_operand.vmem [shape: f32[2,32,256], index: 0, kind: input, shape index: {}]   ;;  %s484_s1 = inlined_call_operand.vmem [shape: f32[8,32], index: 1, kind: input, shape index: {}]   ;;  %s485_s2 = inlined_call_operand.vmem [shape: f32[8,1], index: 2, kind: input, shape index: {}]   ;;  %s486_s3 = inlined_call_operand.vmem [shape: f32[2,8,256], index: 3, kind: output, shape index: {}]  }
   0x1   :  { %s448_s14 = smov 0  }
   0x2 LB: > { %s25_s15 = sadd.s32 1, %s417_s13  ;;  %p362_p0 = scmp.ge.s32.totalorder %s421_s14, 1  ;;  %s421_s14 = sphi %s448_s14, %s13_s14   ;;  %s417_s13 = sphi %s446_s13, %s488_s13   ;;  %s413_s12 = sphi %s444_s12, %s487_s12  }
   0x3   : > { %p27_p1 = scmp.ge.s32.totalorder %s25_s15, 2  ;;  %p158_p2 = scmp.lt.s32.totalorder %s421_s14, 3 }
   0x5   : > { %s490_s15 = smov (%p27_p1, %s25_s15), 0  ;;  %p159_p3 = pnand %p362_p0, %p158_p2 }
   0x6   : > { %p191_p4 = scmp.lt.s32.totalorder (!%p159_p3), %s413_s12, 1 }
   0x7   : > { %162 = sbr.rel (%p159_p3) target bundleno = 153 (0x99), region = 32 }
   0xc   : > { %v219_v0 = vld [vmem:[%s485_s2] sm:$0xff]  ;;  %v423_v1 = vmov 0   ;;  %s492_s12 = smov (!%p191_p4, %s413_s12), 1  ;;  %vm225_vm0 = vcmask 261120  }
   0xd   : > { %398 = vset.pattern.permute.xlu0 %v423_v1  ;;  %s371_s18 = sshll.u32 %s492_s12, 6  ;;  %v210_v10 = vld [vmem:[%s484_s1] sm:$0xff]  ;;  %s372_s24 = sshll.u32 %s492_s12, 4 }
   0xe   : > { %222 = vperm.xlu0 %398, %v219_v0   ;;  %s198_s21 = scalar_lea.vmem %s483_s0, %s371_s18  ;;  %s208_s27 = scalar_lea.vmem %s486_s3, %s372_s24 }
   0xf   : > { %v217_v2 = vld [vmem:[%s198_s21 + $0x30] sm:$0xff]  ;;  %v218_v3 = vld [vmem:[%s198_s21 + $0x38] sm:$0xff]  ;;  %v215_v4 = vld [vmem:[%s198_s21 + $0x20] sm:$0xff] }
  0x10   : > { %241 = vmatpush.msra.mxu0 %v217_v2  ;;  %261 = vmatpush.msra.mxu1 %v218_v3  ;;  %v216_v5 = vld [vmem:[%s198_s21 + $0x28] sm:$0xff]  ;;  %v213_v6 = vld [vmem:[%s198_s21 + $0x10] sm:$0xff]  ;;  %v214_v7 = vld [vmem:[%s198_s21 + $0x18] sm:$0xff] }
  0x11   : > { %v211_v8 = vld [vmem:[%s198_s21] sm:$0xff]  ;;  %v212_v9 = vld [vmem:[%s198_s21 + $0x8] sm:$0xff] }
  0x12   : > { %242 = vmatpush.msra.mxu0 %v215_v4  ;;  %262 = vmatpush.msra.mxu1 %v216_v5 }
  0x14   : > { %243 = vmatpush.msra.mxu0 %v213_v6  ;;  %263 = vmatpush.msra.mxu1 %v214_v7 }
  0x16   : > { %244 = vmatpush.msra.mxu0 %v211_v8  ;;  %264 = vmatpush.msra.mxu1 %v212_v9 }
  0x17   : > { %367 = vmatmul.msk.f32.vlgmr.msra.gmra.mxu0 %vm225_vm0, %v210_v10  ;;  %368 = vmatmul.msk.f32.vlgmr.msra.gmra.mxu1 %vm225_vm0, %v210_v10 }
  0x80   : > { %v223_v11 = vpop.permute.xlu0 %222 }
  0x94   : > { %v246_v12 = vpop.f32.mrf.mxu0  ;;  %v266_v13 = vpop.f32.mrf.mxu1 }
  0x95   : > { %v247_v14 = vadd.f32 %v246_v12, %v223_v11  ;;  %v267_v15 = vadd.f32 %v266_v13, %v223_v11 }
  0x97   : > { %269 = vst [vmem:[%s208_s27] sm:$0xff] %v247_v14 }
  0x98   : > { %270 = vst [vmem:[%s208_s27 + $0x8] sm:$0xff] %v267_v15 }
  0x99 PF: > { %s13_s14 = sadd.s32 1, %s421_s14   ;;  %s487_s12 = smov %s417_s13 }
  0x9a   : > { %p10_p5 = scmp.ge.s32.totalorder %s13_s14, 4   ;;  %s488_s13 = smov %s490_s15 }
  0x9c   :  { %12 = sbr.rel (!%p10_p5) target bundleno = 2 (0x2), region = 62 }

</bundles_post_ra>
